<compile_context>
chip_gen: v5e
topology: v5e:2x2
jax: 0.10.0
libtpu: 0.0.40
codegen_flags: <defaults>
</compile_context>

<pallas_src>
import functools
import math

import jax
import jax.numpy as jnp
from jax.experimental import pallas as pl
from jax.experimental.pallas import tpu as pltpu


def _round_up(a, m):
    return ((a + m - 1) // m) * m


# ----------------------------- Pallas kernel -------------------------------

def _mlp_kernel(*refs, num_layers):
    """refs = (x_ref, w0, b0, w1, b1, ..., w_{L-1}, b_{L-1}, o_ref)."""
    x_ref = refs[0]
    o_ref = refs[-1]
    wb_refs = refs[1:-1]

    h = x_ref[...].astype(jnp.float32)
    for i in range(num_layers):
        w = wb_refs[2 * i][...]
        b = wb_refs[2 * i + 1][...]           # (1, d_out), broadcasts over rows
        h = jnp.dot(h, w, preferred_element_type=jnp.float32) + b
        if i < num_layers - 1:                # ReLU after every hidden layer
            h = jnp.maximum(h, 0.0)
    o_ref[...] = h.astype(o_ref.dtype)


# ------------------------------ wrapper -------------------------------------

def mlp_forward(x, weights, biases):
    """Fused MLP forward.

    x:       (..., in_dim)
    weights: list of (d_in_i, d_out_i) arrays (already (in, out) layout)
    biases:  list of (d_out_i,) arrays
    """
    lead = x.shape[:-1]
    in_dim = x.shape[-1]
    n = int(math.prod(lead)) if lead else 1
    out_dim = weights[-1].shape[1]
    x2 = x.reshape(n, in_dim)

    # Row tiling: pad rows to a sublane multiple; aim for >= 2 grid steps so
    # a "parallel" axis exists for v7x's two TensorCores.
    n8 = _round_up(n, 8)
    if n8 >= 16:
        tm = min(512, _round_up(pl.cdiv(n8, 2), 8))
    else:
        tm = n8
    n_pad = _round_up(n8, tm)
    grid = n_pad // tm
    if n_pad != n:
        x2 = jnp.pad(x2, ((0, n_pad - n), (0, 0)))

    num_layers = len(weights)
    kernel = functools.partial(_mlp_kernel, num_layers=num_layers)

    in_specs = [pl.BlockSpec((tm, in_dim), lambda i: (i, 0))]
    args = [x2]
    for w, b in zip(weights, biases):
        d_in, d_out = w.shape
        in_specs.append(pl.BlockSpec((d_in, d_out), lambda i: (0, 0)))
        in_specs.append(pl.BlockSpec((1, d_out), lambda i: (0, 0)))
        args.append(w)
        args.append(b.reshape(1, d_out))

    out = pl.pallas_call(
        kernel,
        out_shape=jax.ShapeDtypeStruct((n_pad, out_dim), x.dtype),
        grid=(grid,),
        in_specs=in_specs,
        out_specs=pl.BlockSpec((tm, out_dim), lambda i: (i, 0)),
        compiler_params=pltpu.CompilerParams(
            dimension_semantics=("parallel",)),
    )(*args)

    return out[:n].reshape(*lead, out_dim)


# --------------------------- parameter init ---------------------------------

def init_params(key, in_dim, out_dim, hidden_list):
    """torch.nn.Linear-style uniform init; weights stored as (in, out)
    (i.e. the torch (out, in) -> (in, out) transpose is done ONCE here,
    outside the forward path)."""
    dims = [in_dim] + list(hidden_list) + [out_dim]
    weights, biases = [], []
    keys = jax.random.split(key, 2 * (len(dims) - 1))
    for i in range(len(dims) - 1):
        d_in, d_out = dims[i], dims[i + 1]
        bound = 1.0 / math.sqrt(d_in)
        w = jax.random.uniform(keys[2 * i], (d_in, d_out), jnp.float32,
                               -bound, bound)
        b = jax.random.uniform(keys[2 * i + 1], (d_out,), jnp.float32,
                               -bound, bound)
        weights.append(w)
        biases.append(b)
    return weights, biases


# ------------------------- pure-JAX reference --------------------------------

def reference_forward(x, weights, biases):
    lead = x.shape[:-1]
    h = x.reshape(-1, x.shape[-1])
    num_layers = len(weights)
    for i in range(num_layers):
        h = jnp.dot(h, weights[i], preferred_element_type=jnp.float32)
        h = h + biases[i][None, :]
        if i < num_layers - 1:
            h = jax.nn.relu(h)
    return h.reshape(*lead, weights[-1].shape[1]).astype(x.dtype)


# --------------------------------- main --------------------------------------

if __name__ == "__main__":
    batch, seq = 2, 8
    in_dim, hidden_list, out_dim = 16, [32, 32], 4

    key = jax.random.PRNGKey(0)
    k_param, k_x = jax.random.split(key)
    weights, biases = init_params(k_param, in_dim, out_dim, hidden_list)

    x = jax.random.normal(k_x, (batch, seq, in_dim), jnp.float32)

    out = mlp_forward(x, weights, biases)
    out = jax.block_until_ready(out)

    ref = reference_forward(x, weights, biases)
    assert out.shape == (batch, seq, out_dim)
    assert jnp.allclose(out, ref, atol=1e-4, rtol=1e-4)

    print("KERNEL_OK")
</pallas_src>

<mosaic_0001>
module attributes {stable_mosaic.version = 11 : i64} {
  func.func @_mlp_kernel(%arg0: i32, %arg1: memref<8x16xf32, #tpu.memory_space<vmem>>, %arg2: memref<16x32xf32, #tpu.memory_space<vmem>>, %arg3: memref<1x32xf32, #tpu.memory_space<vmem>>, %arg4: memref<32x32xf32, #tpu.memory_space<vmem>>, %arg5: memref<1x32xf32, #tpu.memory_space<vmem>>, %arg6: memref<32x4xf32, #tpu.memory_space<vmem>>, %arg7: memref<1x4xf32, #tpu.memory_space<vmem>>, %arg8: memref<8x4xf32, #tpu.memory_space<vmem>>) attributes {dimension_semantics = [#tpu.dimension_semantics<parallel>], iteration_bounds = array<i64: 2>, scalar_prefetch = 0 : i64, scratch_operands = 0 : i64, tpu.core_type = #tpu.core_type<tc>, window_params = [{transform_indices = @transform_0, window_bounds = array<i64: 8, 16>}, {pipeline_mode = #tpu.pipeline_mode<synchronous>, transform_indices = @transform_1, window_bounds = array<i64: 16, 32>}, {pipeline_mode = #tpu.pipeline_mode<synchronous>, transform_indices = @transform_2, window_bounds = array<i64: 1, 32>}, {pipeline_mode = #tpu.pipeline_mode<synchronous>, transform_indices = @transform_3, window_bounds = array<i64: 32, 32>}, {pipeline_mode = #tpu.pipeline_mode<synchronous>, transform_indices = @transform_4, window_bounds = array<i64: 1, 32>}, {pipeline_mode = #tpu.pipeline_mode<synchronous>, transform_indices = @transform_5, window_bounds = array<i64: 32, 4>}, {pipeline_mode = #tpu.pipeline_mode<synchronous>, transform_indices = @transform_6, window_bounds = array<i64: 1, 4>}, {transform_indices = @transform_7, window_bounds = array<i64: 8, 4>}]} {
    %c0 = arith.constant 0 : index
    %c0_0 = arith.constant 0 : index
    %0 = vector.load %arg1[%c0, %c0_0] : memref<8x16xf32, #tpu.memory_space<vmem>>, vector<8x16xf32>
    %c0_1 = arith.constant 0 : index
    %c0_2 = arith.constant 0 : index
    %1 = vector.load %arg2[%c0_1, %c0_2] : memref<16x32xf32, #tpu.memory_space<vmem>>, vector<16x32xf32>
    %c0_3 = arith.constant 0 : index
    %c0_4 = arith.constant 0 : index
    %2 = vector.load %arg3[%c0_3, %c0_4] : memref<1x32xf32, #tpu.memory_space<vmem>>, vector<1x32xf32>
    %cst = arith.constant dense<0.000000e+00> : vector<8x32xf32>
    %3 = tpu.matmul %0, %1, %cst {dimension_numbers = #tpu.dot_dimension_numbers<[1], [0], [0], [1], [0, 0, 1, 1], [], []>} : vector<8x16xf32>, vector<16x32xf32>, vector<8x32xf32> -> vector<8x32xf32>
    %4 = vector.broadcast %2 : vector<1x32xf32> to vector<8x32xf32>
    %5 = arith.addf %3, %4 : vector<8x32xf32>
    %cst_5 = arith.constant 0.000000e+00 : f32
    %6 = vector.broadcast %cst_5 : f32 to vector<8x32xf32>
    %7 = arith.maximumf %5, %6 : vector<8x32xf32>
    %c0_6 = arith.constant 0 : index
    %c0_7 = arith.constant 0 : index
    %8 = vector.load %arg4[%c0_6, %c0_7] : memref<32x32xf32, #tpu.memory_space<vmem>>, vector<32x32xf32>
    %c0_8 = arith.constant 0 : index
    %c0_9 = arith.constant 0 : index
    %9 = vector.load %arg5[%c0_8, %c0_9] : memref<1x32xf32, #tpu.memory_space<vmem>>, vector<1x32xf32>
    %cst_10 = arith.constant dense<0.000000e+00> : vector<8x32xf32>
    %10 = tpu.matmul %7, %8, %cst_10 {dimension_numbers = #tpu.dot_dimension_numbers<[1], [0], [0], [1], [0, 0, 1, 1], [], []>} : vector<8x32xf32>, vector<32x32xf32>, vector<8x32xf32> -> vector<8x32xf32>
    %11 = vector.broadcast %9 : vector<1x32xf32> to vector<8x32xf32>
    %12 = arith.addf %10, %11 : vector<8x32xf32>
    %cst_11 = arith.constant 0.000000e+00 : f32
    %13 = vector.broadcast %cst_11 : f32 to vector<8x32xf32>
    %14 = arith.maximumf %12, %13 : vector<8x32xf32>
    %c0_12 = arith.constant 0 : index
    %c0_13 = arith.constant 0 : index
    %15 = vector.load %arg6[%c0_12, %c0_13] : memref<32x4xf32, #tpu.memory_space<vmem>>, vector<32x4xf32>
    %c0_14 = arith.constant 0 : index
    %c0_15 = arith.constant 0 : index
    %16 = vector.load %arg7[%c0_14, %c0_15] : memref<1x4xf32, #tpu.memory_space<vmem>>, vector<1x4xf32>
    %cst_16 = arith.constant dense<0.000000e+00> : vector<8x4xf32>
    %17 = tpu.matmul %14, %15, %cst_16 {dimension_numbers = #tpu.dot_dimension_numbers<[1], [0], [0], [1], [0, 0, 1, 1], [], []>} : vector<8x32xf32>, vector<32x4xf32>, vector<8x4xf32> -> vector<8x4xf32>
    %18 = vector.broadcast %16 : vector<1x4xf32> to vector<8x4xf32>
    %19 = arith.addf %17, %18 : vector<8x4xf32>
    %c0_17 = arith.constant 0 : index
    %c0_18 = arith.constant 0 : index
    %20 = vector.load %arg8[%c0_17, %c0_18] : memref<8x4xf32, #tpu.memory_space<vmem>>, vector<8x4xf32>
    tpu.vector_store %arg8[%c0_17, %c0_18], %19 {strides = array<i32>} : memref<8x4xf32, #tpu.memory_space<vmem>>, vector<8x4xf32>,
    return
  }
  func.func @transform_0(%arg0: i32) -> (i32, i32) {
    %c0_i32 = arith.constant 0 : i32
    %c0_i32_0 = arith.constant 0 : i32
    return %arg0, %c0_i32 : i32, i32
  }
  func.func @transform_1(%arg0: i32) -> (i32, i32) {
    %c0_i32 = arith.constant 0 : i32
    %c0_i32_0 = arith.constant 0 : i32
    %c0_i32_1 = arith.constant 0 : i32
    return %c0_i32, %c0_i32_0 : i32, i32
  }
  func.func @transform_2(%arg0: i32) -> (i32, i32) {
    %c0_i32 = arith.constant 0 : i32
    %c0_i32_0 = arith.constant 0 : i32
    %c0_i32_1 = arith.constant 0 : i32
    return %c0_i32, %c0_i32_0 : i32, i32
  }
  func.func @transform_3(%arg0: i32) -> (i32, i32) {
    %c0_i32 = arith.constant 0 : i32
    %c0_i32_0 = arith.constant 0 : i32
    %c0_i32_1 = arith.constant 0 : i32
    return %c0_i32, %c0_i32_0 : i32, i32
  }
  func.func @transform_4(%arg0: i32) -> (i32, i32) {
    %c0_i32 = arith.constant 0 : i32
    %c0_i32_0 = arith.constant 0 : i32
    %c0_i32_1 = arith.constant 0 : i32
    return %c0_i32, %c0_i32_0 : i32, i32
  }
  func.func @transform_5(%arg0: i32) -> (i32, i32) {
    %c0_i32 = arith.constant 0 : i32
    %c0_i32_0 = arith.constant 0 : i32
    %c0_i32_1 = arith.constant 0 : i32
    return %c0_i32, %c0_i32_0 : i32, i32
  }
  func.func @transform_6(%arg0: i32) -> (i32, i32) {
    %c0_i32 = arith.constant 0 : i32
    %c0_i32_0 = arith.constant 0 : i32
    %c0_i32_1 = arith.constant 0 : i32
    return %c0_i32, %c0_i32_0 : i32, i32
  }
  func.func @transform_7(%arg0: i32) -> (i32, i32) {
    %c0_i32 = arith.constant 0 : i32
    %c0_i32_0 = arith.constant 0 : i32
    return %arg0, %c0_i32 : i32, i32
  }
}

</mosaic_0001>

<bundles_post_ra>
// kernel: tpu_custom_call.1
= control target key start
LH: loop header
LB: loop body
LE: loop exit
PB: predicated region body
PF: predicated region fallthrough
CT: control target
= control target key end

     0   :  { %12 = vsyncpa [#allocation3], 0  ;;  %s835_s0 = inlined_call_operand.hbm [shape: f32[16,16], index: 0, kind: input, shape index: {}]   ;;  %s836_s1 = inlined_call_operand.hbm [shape: f32[16,32], index: 1, kind: input, shape index: {}]   ;;  %s837_s2 = inlined_call_operand.vmem [shape: f32[1,32], index: 2, kind: input, shape index: {}]   ;;  %s838_s3 = inlined_call_operand.vmem [shape: f32[32,32], index: 3, kind: input, shape index: {}]   ;;  %s839_s4 = inlined_call_operand.vmem [shape: f32[1,32], index: 4, kind: input, shape index: {}]   ;;  %s840_s5 = inlined_call_operand.vmem [shape: f32[32,4], index: 5, kind: input, shape index: {}]   ;;  %s841_s6 = inlined_call_operand.vmem [shape: f32[1,4], index: 6, kind: input, shape index: {}]   ;;  %s842_s7 = inlined_call_operand.vmem [shape: f32[16,4], index: 7, kind: output, shape index: {}]  }
   0x1   :  { %14 = vsyncpa [#allocation3 + $0x1], 0 }
   0x2   :  { %15 = vsyncpa [#allocation5], 0  ;;  %s699_s24 = smov 0   ;;  %s701_s25 = smov 0  }
   0x3   :  { %s703_s26 = smov 0   ;;  %s705_s27 = smov 0  }
   0x4 LB: > { %s215_s30 = sshll.u32 %s836_s1, 4  ;;  %s721_s8 = sadd.s32 4294967295, %s654_s27   ;;  %s654_s27 = sphi %s705_s27, %s849_s27   ;;  %s650_s26 = sphi %s703_s26, %s848_s26   ;;  %s646_s25 = sphi %s701_s25, %s847_s25   ;;  %s642_s24 = sphi %s699_s24, %s846_s24   ;;  %s216_s30 = int_to_ptr.hbm [resolvable:$true] %s215_s30 }
   0x5   : > { %p487_p0 = scmp.ge.s32.totalorder %s654_s27, 1  ;;  %p42_p1 = scmp.eq.s32.totalorder %s721_s8, 0 }
   0x6   : > { %p204_p2 = scmp.lt.s32.totalorder %s654_s27, 3  ;;  %s656_s10 = smov [#allocation4]  }
   0x7   : > { %s217_s11 = sshll.u32 %s656_s10, 4  ;;  %s657_s12 = smov 128   ;;  %s218_s11 = int_to_ptr.vmem [resolvable:$true] %s217_s11 }
   0x8   : > { %p726_p3 = pnand %p487_p0, %p204_p2  ;;  %s658_s13 = smov 8  }
   0x9   : > { %s735_s14 = sadd.s32 1, %s654_s27   ;;  %s28_s16 = sadd.s32 1, %s650_s26 }
   0xa   : > { %p507_p4 = pneg %p726_p3  ;;  %s25_s15 = ssub.s32 %s654_s27, %s735_s14 }
   0xb   : > { %p26_p6 = scmp.eq.s32.totalorder %s25_s15, 0  ;;  %p35_p7 = scmp.ne.s32.totalorder %s650_s26, %s646_s25 }
   0xc   : > { %p508_p5 = pnand %p507_p4, %p42_p1  ;;  %p36_p8 = scmp.eq.s32.totalorder %s654_s27, 0 }
   0xd   : > { %p41_p9 = scmp.ne.s32.totalorder %s646_s25, %s642_s24  ;;  %p516_p12 = scmp.lt.s32.totalorder %s654_s27, 2 }
   0xe   : > { %510 = dma.hbm_to_vmem [thread:$0]  (!%p508_p5), %s216_s30, 256, %s218_s11, [#allocation5], %s657_s12, %s657_s12, %s658_s13  }
   0xf   : > { %s745_s17 = scalar_select %p26_p6, %s650_s26, %s28_s16  }
  0x10   : > { %p37_p10 = por %p36_p8, %p35_p7  ;;  %p749_p11 = por %p42_p1, %p41_p9 }
  0x11   : > { %s246_s19 = sand.u32 1, %s650_s26   ;;  %s491_s21 = sshll.u32 %s654_s27, 3 }
  0x12   : > { %s490_s20 = sshll.u32 %s246_s19, 3  ;;  %s254_s28 = scalar_lea.hbm %s835_s0, %s491_s21 }
  0x13   : > { %s250_s29 = scalar_lea.vmem [#allocation2], %s490_s20  ;;  %s256_s10 = sshll.u32 %s254_s28, 4  ;;  %s257_s10 = int_to_ptr.hbm [resolvable:$true] %s256_s10 }
  0x14   : > { %s258_s30 = sshll.u32 %s250_s29, 4  ;;  %p759_p13 = pnand %p516_p12, %p37_p10  ;;  %s259_s30 = int_to_ptr.vmem [resolvable:$true] %s258_s30 }
  0x15   : > { %s247_s11 = scalar_lea.sflag [#allocation3], %s246_s19  ;;  %s586_s12 = sshra.s32 %s257_s10, 4  ;;  %s587_s12 = int_to_ptr.hbm [resolvable:$true] %s586_s12 }
  0x16   : > { %s588_s13 = scalar_lea.hbm %s587_s12, 8  ;;  %p590_p2 = pneg %p759_p13 }
  0x17   : > { %p589_p0 = scmp.ne.s32.totalorder %s587_s12, %s588_s13  ;;  %s593_s16 = scalar_lea.hbm %s835_s0, 16 }
  0x18   : > { %p594_p6 = scmp.lt.s32.totalorder %s587_s12, %s835_s0  ;;  %p595_p7 = scmp.lt.s32.totalorder %s593_s16, %s588_s13 }
  0x19   : > { %p591_p4 = pnand %p590_p2, %p589_p0 }
  0x1a   : > { %p596_p8 = por %p595_p7, %p594_p6 }
  0x1b   : > { %p592_p5 = pneg %p591_p4 }
  0x1d   : > { %p597_p9 = pnand %p596_p8, %p592_p5 }
  0x1f   : > { %600 = shalt.err (!%p597_p9)
}
  0x20   : > { %514 = dma.hbm_to_vmem [thread:$0]  (!%p759_p13), %s257_s10, 128, %s259_s30, %s247_s11  }
  0x21   : > { %267 = sbr.rel (%p726_p3) target bundleno = 440 (0x1b8), region = 48  ;;  %s269_s19 = sand.u32 (!%p726_p3), 1, %s646_s25  }
  0x22   : > { %s493_s22 = sshll.u32 (!%p726_p3), %s269_s19, 3  ;;  %s270_s23 = scalar_lea.sflag (!%p726_p3), [#allocation3], %s269_s19 }
  0x23   : > { %s273_s28 = scalar_lea.vmem (!%p726_p3), [#allocation2], %s493_s22 }
  0x26   : > { %633 = dma.done.wait (%p749_p11), %s270_s23, 128  }
  0x27   : > { %635 = vsyncadd (%p749_p11), %s270_s23, 4294967168 }
  0x28   : > { %637 = dma.done.wait (%p42_p1), [#allocation5], 256  }
  0x29   : > { %639 = vsyncadd (%p42_p1), [#allocation5], 4294967040  ;;  %v315_v0 = vld [vmem:[#allocation4 + $0x8] sm:$0xff]  ;;  %v314_v1 = vld [vmem:[#allocation4] sm:$0xff]  ;;  %vm320_vm0 = vcmask 130048   ;;  %vm353_vm1 = vcmask 261120  }
  0x2a   : > { %338 = vmatpush.msra.mxu0 %v315_v0  ;;  %v313_v2 = vld [vmem:[%s273_s28] sm:$0xff]  ;;  %v348_v3 = vld [vmem:[%s838_s3 + $0x18] sm:$0xff]  ;;  %v347_v4 = vld [vmem:[%s838_s3 + $0x10] sm:$0xff]  ;;  %p309_p1 = scmp.lt.s32.totalorder %s721_s8, 1  ;;  %vm409_vm2 = vcmask 31744  }
  0x2b   : > { %369 = vmatpush.msra.mxu1 %v348_v3  ;;  %v346_v5 = vld [vmem:[%s838_s3 + $0x8] sm:$0xff]  ;;  %v345_v6 = vld [vmem:[%s838_s3] sm:$0xff]  ;;  %v381_v7 = vld [vmem:[%s840_s5 + $0x18] sm:$0xff] }
  0x2c   : > { %339 = vmatpush.msra.mxu0 %v314_v1  ;;  %401 = vmatpush.msra.mxu2 %v381_v7  ;;  %v553_v8 = vld [vmem:[%s837_s2] ss:$0 sm:$0xff]  ;;  %v380_v12 = vld [vmem:[%s840_s5 + $0x10] sm:$0xff]  ;;  %v379_v13 = vld [vmem:[%s840_s5 + $0x8] sm:$0xff]  ;;  %s851_s8 = smov (!%p309_p1, %s721_s8), 1 }
  0x2d   : > { %496 = vmatmul.msk.f32.vlgmr.msra.gmra.mxu0 %vm320_vm0, %v313_v2  ;;  %370 = vmatpush.msra.mxu1 %v347_v4  ;;  %v378_v14 = vld [vmem:[%s840_s5] sm:$0xff]  ;;  %s495_s18 = sshll.u32 %s851_s8, 3 }
  0x2e   : > { %402 = vmatpush.msra.mxu2 %v380_v12  ;;  %v554_v15 = vld [vmem:[%s839_s4] ss:$0 sm:$0xff]  ;;  %s312_s12 = scalar_lea.vmem %s842_s7, %s495_s18 }
  0x2f   : > { %371 = vmatpush.msra.mxu1 %v346_v5  ;;  %v555_v19 = vld [vmem:[%s841_s6] ss:$0 sm:$0xff] }
  0x30   : > { %403 = vmatpush.msra.mxu2 %v379_v13 }
  0x31   : > { %372 = vmatpush.msra.mxu1 %v345_v6 }
  0x32   : > { %404 = vmatpush.msra.mxu2 %v378_v14 }
  0xaa   : > { %v341_v9 = vpop.f32.mrf.mxu0 }
  0xab   : > { %v342_v10 = vadd.f32 %v553_v8, %v341_v9 }
  0xad   : > { %v344_v11 = vmax.f32 %v342_v10, 0.0 }
  0xaf   : > { %497 = vmatmul.msk.f32.vlgmr.msra.gmra.mxu1 %vm353_vm1, %v344_v11 }
 0x12c   : > { %v374_v16 = vpop.f32.mrf.mxu1 }
 0x12d   : > { %v375_v17 = vadd.f32 %v554_v15, %v374_v16 }
 0x12f   : > { %v377_v18 = vmax.f32 %v375_v17, 0.0 }
 0x131   : > { %498 = vmatmul.msk.f32.vlgmr.msra.gmra.mxu2 %vm353_vm1, %v377_v18 }
 0x1b4   : > { %v406_v20 = vpop.f32.mrf.mxu2 }
 0x1b5   : > { %v407_v21 = vadd.f32 %v555_v19, %v406_v20 }
 0x1b7   : > { %410 = vst.msk [vmem:[%s312_s12] sm:$0xff] %vm409_vm2, %v407_v21 }
 0x1b8 PF: > { %p18_p3 = scmp.ge.s32.totalorder %s735_s14, 4   ;;  %s846_s24 = smov %s646_s25 }
 0x1b9   : > { %s847_s25 = smov %s650_s26  ;;  %s848_s26 = smov %s745_s17 }
 0x1ba   : > { %s849_s27 = smov %s735_s14  ;;  %20 = sbr.rel (!%p18_p3) target bundleno = 4 (0x4), region = 92 }
 0x1bf   :  { %430 = vsyncpa [#allocation3], 1 }
 0x1c0   :  { %432 = vsyncpa [#allocation3 + $0x1], 1 }
 0x1c1   :  { %433 = vsyncpa [#allocation5], 1 }

</bundles_post_ra>
